<compile_context>
chip_gen: v7x
topology: tpu7x:2x2x1
jax: 0.10.0
libtpu: 0.0.40
codegen_flags: <defaults>
</compile_context>

<pallas_src>
import math
import functools

import jax
import jax.numpy as jnp
from jax.experimental import pallas as pl
from jax.experimental.pallas import tpu as pltpu


# ----------------------------- helpers (used in-kernel and in reference)

def _layernorm(x, gamma, beta, eps=1e-5):
    mean = jnp.mean(x, axis=-1, keepdims=True)
    var = jnp.mean((x - mean) ** 2, axis=-1, keepdims=True)
    return (x - mean) * jax.lax.rsqrt(var + eps) * gamma + beta


def _new_gelu(x):
    c = math.sqrt(2.0 / math.pi)
    return 0.5 * x * (1.0 + jnp.tanh(c * (x + 0.044715 * (x * x * x))))


# ----------------------------- Pallas kernel: whole Encoder, grid = (B//bb, L)

def encoder_kernel(x_ref,
                   wqkv_ref, bqkv_ref, wo_ref, bo_ref,
                   g1_ref, be1_ref, g2_ref, be2_ref,
                   w1_ref, b1_ref, w2_ref, b2_ref,
                   out_ref,
                   *, num_heads, head_size):
    l = pl.program_id(1)

    # Residual stream lives in the resident output block across the layer axis.
    @pl.when(l == 0)
    def _():
        out_ref[...] = x_ref[...]

    Bb, S, H = out_ref.shape
    cdt = wqkv_ref.dtype                  # matmul compute dtype (f32 or bf16)

    # (Bb, S, H) -> (Bb*S, H): leading-dim collapse (S is sublane-aligned),
    # so the dense matmuls get M = Bb*S rows of MXU fill.
    x = out_ref[...].reshape(Bb * S, H)   # residual stream, f32

    # --- LayerNorm1 + multi-head self-attention ----------------------------
    h = _layernorm(x, g1_ref[0], be1_ref[0])

    # Fused dense QKV: ONE (Bb*S, H) @ (H, 3H) MXU matmul.
    qkv = jnp.dot(h.astype(cdt), wqkv_ref[0],
                  preferred_element_type=jnp.float32) + bqkv_ref[0]

    def split_heads(x2d):
        # (Bb*S, H) -> (NH*Bb, S, hs), head-major, via static lane slices +
        # a leading-axis concat (no minor-dim transpose in-kernel).
        x3 = x2d.reshape(Bb, S, H)
        return jnp.concatenate(
            [x3[:, :, n * head_size:(n + 1) * head_size]
             for n in range(num_heads)], axis=0)

    q = split_heads(qkv[:, 0 * H:1 * H])
    k = split_heads(qkv[:, 1 * H:2 * H])
    v = split_heads(qkv[:, 2 * H:3 * H])

    # TODO(synk): at large S, produce k directly K-major to avoid the implied
    # per-head transpose inside the score matmul (irrelevant at S=8).
    scale = 1.0 / math.sqrt(head_size)
    s = jnp.einsum('bqd,bkd->bqk', q.astype(cdt), k.astype(cdt),
                   preferred_element_type=jnp.float32) * scale
    s = s - jnp.max(s, axis=-1, keepdims=True)
    e = jnp.exp(s)
    p = e / jnp.sum(e, axis=-1, keepdims=True)      # exact divide (cheap here)
    # TODO(synk): attention-probs dropout omitted (inference / p = 0).
    ctx = jnp.einsum('bqk,bkd->bqd', p.astype(cdt), v.astype(cdt),
                     preferred_element_type=jnp.float32)   # (NH*Bb, S, hs)

    # Merge heads back into lanes; output projection is ONE (Bb*S, H) @ (H, H)
    # matmul with K = H (== concat(heads) @ W_o), no per-head passes, no sum.
    ctx2d = jnp.concatenate(
        [ctx[n * Bb:(n + 1) * Bb] for n in range(num_heads)],
        axis=-1).reshape(Bb * S, H)
    attn = jnp.dot(ctx2d.astype(cdt), wo_ref[0],
                   preferred_element_type=jnp.float32) + bo_ref[0]
    # TODO(synk): attention-output dropout omitted (inference / p = 0).
    x = x + attn

    # --- LayerNorm2 + MLP ---------------------------------------------------
    h2 = _layernorm(x, g2_ref[0], be2_ref[0])
    m = jnp.dot(h2.astype(cdt), w1_ref[0],
                preferred_element_type=jnp.float32) + b1_ref[0]
    m = _new_gelu(m)
    m = jnp.dot(m.astype(cdt), w2_ref[0],
                preferred_element_type=jnp.float32) + b2_ref[0]
    # TODO(synk): hidden dropout omitted (inference / p = 0).

    out_ref[...] = (x + m).reshape(Bb, S, H)


# ----------------------------- wrapper: stack weights + single pallas_call

def _stack_layer_params(layer_params, weight_dtype=jnp.float32):
    """Stack per-layer params along a leading layer axis; fuse QKV weights."""
    st = lambda n: jnp.stack([p[n] for p in layer_params], axis=0)
    s = {
        "wqkv": jnp.concatenate([st("wq"), st("wk"), st("wv")], axis=-1),  # (L,H,3H)
        "bqkv": jnp.concatenate([st("bq"), st("bk"), st("bv")], axis=-1),  # (L,1,3H)
        "wo": st("wo"), "bo": st("bo"),
        "g1": st("g1"), "be1": st("be1"),
        "g2": st("g2"), "be2": st("be2"),
        "w1": st("w1"), "b1": st("b1"),
        "w2": st("w2"), "b2": st("b2"),
    }
    # Only the MXU weight operands get the (optional) bf16 cast; LayerNorm
    # params, biases, softmax and the residual stream stay f32.
    for n in ("wqkv", "wo", "w1", "w2"):
        s[n] = s[n].astype(weight_dtype)
    return s


def encoder_forward(x, layer_params, num_heads, *,
                    weight_dtype=jnp.float32, batch_block=None):
    """Encoder.forward with output_attentions=False -> (x, None)."""
    B, S, H = x.shape
    L = len(layer_params)
    hs = H // num_heads
    I = layer_params[0]["w1"].shape[1]
    p = _stack_layer_params(layer_params, weight_dtype)

    # Default: whole batch in one block -> weights streamed from HBM exactly
    # once, L grid steps total.  Only shard the batch (batch_block < B) when B
    # is large enough to amortize the duplicated weight DMA (v7x 2-TC note).
    bb = B if batch_block is None else batch_block
    assert B % bb == 0

    order = ("wqkv", "bqkv", "wo", "bo", "g1", "be1", "g2", "be2",
             "w1", "b1", "w2", "b2")

    x_spec = pl.BlockSpec((bb, S, H), lambda b, l: (b, 0, 0))

    def lspec(arr):
        return pl.BlockSpec((1,) + arr.shape[1:], lambda b, l: (l, 0, 0))

    in_specs = [x_spec] + [lspec(p[n]) for n in order]

    kern = functools.partial(encoder_kernel, num_heads=num_heads, head_size=hs)

    flops = B * L * S * (8 * H * H + 4 * S * H + 4 * H * I)
    cost = pl.CostEstimate(
        flops=flops,
        transcendentals=B * L * (num_heads * S * S + S * I),
        bytes_accessed=2 * B * S * H * 4
        + (B // bb) * sum(int(p[n].size) * p[n].dtype.itemsize for n in order),
    )

    out = pl.pallas_call(
        kern,
        out_shape=jax.ShapeDtypeStruct((B, S, H), x.dtype),
        grid_spec=pltpu.PrefetchScalarGridSpec(
            num_scalar_prefetch=0,
            grid=(B // bb, L),                 # batch parallel, layers carried
            in_specs=in_specs,
            out_specs=pl.BlockSpec((bb, S, H), lambda b, l: (b, 0, 0)),
        ),
        # TODO(synk): at production H/I set vmem_limit_bytes explicitly and/or
        # shorten weight buffering (pl.Buffered(1)) to fit v7x's 64 MiB VMEM.
        compiler_params=pltpu.CompilerParams(
            dimension_semantics=("parallel", "arbitrary")),
        cost_estimate=cost,
    )(x, *[p[n] for n in order])
    return out, None


# ----------------------------- pure-JAX reference (for correctness check)

def encoder_reference(x, layer_params, num_heads):
    H = x.shape[-1]
    head_size = H // num_heads
    for p in layer_params:
        h = _layernorm(x, p["g1"][0], p["be1"][0])
        q = h @ p["wq"] + p["bq"][0]
        k = h @ p["wk"] + p["bk"][0]
        v = h @ p["wv"] + p["bv"][0]
        outs = []
        for hd in range(num_heads):
            sl = slice(hd * head_size, (hd + 1) * head_size)
            s = (q[..., sl] @ jnp.swapaxes(k[..., sl], -1, -2)) / math.sqrt(head_size)
            pmat = jax.nn.softmax(s, axis=-1)
            outs.append(pmat @ v[..., sl])
        attn = jnp.concatenate(outs, axis=-1) @ p["wo"] + p["bo"][0]
        x = x + attn
        h2 = _layernorm(x, p["g2"][0], p["be2"][0])
        m = _new_gelu(h2 @ p["w1"] + p["b1"][0]) @ p["w2"] + p["b2"][0]
        x = x + m
    return x


# ----------------------------- parameter init + main

def init_params(key, num_layers, H, I):
    layers = []
    for l in range(num_layers):
        ks = jax.random.split(jax.random.fold_in(key, l), 10)
        w = lambda k, shape: (0.02 * jax.random.normal(k, shape, jnp.float32))
        layers.append(dict(
            wq=w(ks[0], (H, H)), bq=w(ks[1], (1, H)),
            wk=w(ks[2], (H, H)), bk=w(ks[3], (1, H)),
            wv=w(ks[4], (H, H)), bv=w(ks[5], (1, H)),
            wo=w(ks[6], (H, H)), bo=w(ks[7], (1, H)),
            g1=jnp.ones((1, H), jnp.float32), be1=jnp.zeros((1, H), jnp.float32),
            g2=jnp.ones((1, H), jnp.float32), be2=jnp.zeros((1, H), jnp.float32),
            w1=w(ks[8], (H, I)), b1=jnp.zeros((1, I), jnp.float32),
            w2=w(ks[9], (I, H)), b2=jnp.zeros((1, H), jnp.float32),
        ))
    return layers


if __name__ == "__main__":
    # config: hidden_size=32, num_attention_heads=4, intermediate_size=64,
    # num_hidden_layers=2, qkv_bias=True, dropout probs=0.0
    B, S, H, NH, I, L = 2, 8, 32, 4, 64, 2

    key = jax.random.PRNGKey(0)
    kx, kp = jax.random.split(key)
    x = jax.random.normal(kx, (B, S, H), jnp.float32)
    layer_params = init_params(kp, L, H, I)

    out, _ = encoder_forward(x, layer_params, NH)   # f32 weights (exact path)
    out = jax.block_until_ready(out)

    ref = encoder_reference(x, layer_params, NH)
    assert out.shape == (B, S, H)
    assert jnp.allclose(out, ref, atol=1e-4, rtol=1e-4), "mismatch vs reference"

    print("KERNEL_OK")
</pallas_src>

<mosaic_0001>
module attributes {stable_mosaic.version = 11 : i64} {
  func.func @encoder_kernel(%arg0: i32, %arg1: i32, %arg2: memref<2x8x32xf32, #tpu.memory_space<vmem>>, %arg3: memref<1x32x96xf32, #tpu.memory_space<vmem>>, %arg4: memref<1x1x96xf32, #tpu.memory_space<vmem>>, %arg5: memref<1x32x32xf32, #tpu.memory_space<vmem>>, %arg6: memref<1x1x32xf32, #tpu.memory_space<vmem>>, %arg7: memref<1x1x32xf32, #tpu.memory_space<vmem>>, %arg8: memref<1x1x32xf32, #tpu.memory_space<vmem>>, %arg9: memref<1x1x32xf32, #tpu.memory_space<vmem>>, %arg10: memref<1x1x32xf32, #tpu.memory_space<vmem>>, %arg11: memref<1x32x64xf32, #tpu.memory_space<vmem>>, %arg12: memref<1x1x64xf32, #tpu.memory_space<vmem>>, %arg13: memref<1x64x32xf32, #tpu.memory_space<vmem>>, %arg14: memref<1x1x32xf32, #tpu.memory_space<vmem>>, %arg15: memref<2x8x32xf32, #tpu.memory_space<vmem>>) attributes {dimension_semantics = [#tpu.dimension_semantics<parallel>, #tpu.dimension_semantics<arbitrary>], iteration_bounds = array<i64: 1, 2>, scalar_prefetch = 0 : i64, scratch_operands = 0 : i64, tpu.core_type = #tpu.core_type<tc>, window_params = [{transform_indices = @transform_0, window_bounds = array<i64: 2, 8, 32>}, {transform_indices = @transform_1, window_bounds = array<i64: 1, 32, 96>}, {transform_indices = @transform_2, window_bounds = array<i64: 1, 1, 96>}, {transform_indices = @transform_3, window_bounds = array<i64: 1, 32, 32>}, {transform_indices = @transform_4, window_bounds = array<i64: 1, 1, 32>}, {transform_indices = @transform_5, window_bounds = array<i64: 1, 1, 32>}, {transform_indices = @transform_6, window_bounds = array<i64: 1, 1, 32>}, {transform_indices = @transform_7, window_bounds = array<i64: 1, 1, 32>}, {transform_indices = @transform_8, window_bounds = array<i64: 1, 1, 32>}, {transform_indices = @transform_9, window_bounds = array<i64: 1, 32, 64>}, {transform_indices = @transform_10, window_bounds = array<i64: 1, 1, 64>}, {transform_indices = @transform_11, window_bounds = array<i64: 1, 64, 32>}, {transform_indices = @transform_12, window_bounds = array<i64: 1, 1, 32>}, {transform_indices = @transform_13, window_bounds = array<i64: 2, 8, 32>}]} {
    %c0_i32 = arith.constant 0 : i32
    %0 = arith.cmpi eq, %arg1, %c0_i32 : i32
    %1 = arith.extui %0 : i1 to i32
    %c0_i32_0 = arith.constant 0 : i32
    %2 = arith.cmpi ne, %1, %c0_i32_0 : i32
    scf.if %2 {
      %c0_64 = arith.constant 0 : index
      %c0_65 = arith.constant 0 : index
      %c0_66 = arith.constant 0 : index
      %142 = vector.load %arg2[%c0_64, %c0_65, %c0_66] : memref<2x8x32xf32, #tpu.memory_space<vmem>>, vector<2x8x32xf32>
      %c0_67 = arith.constant 0 : index
      %c0_68 = arith.constant 0 : index
      %c0_69 = arith.constant 0 : index
      %143 = vector.load %arg15[%c0_67, %c0_68, %c0_69] : memref<2x8x32xf32, #tpu.memory_space<vmem>>, vector<2x8x32xf32>
      tpu.vector_store %arg15[%c0_67, %c0_68, %c0_69], %142 {strides = array<i32>} : memref<2x8x32xf32, #tpu.memory_space<vmem>>, vector<2x8x32xf32>,
    } else {
    }
    %c0 = arith.constant 0 : index
    %c0_1 = arith.constant 0 : index
    %c0_2 = arith.constant 0 : index
    %3 = vector.load %arg15[%c0, %c0_1, %c0_2] : memref<2x8x32xf32, #tpu.memory_space<vmem>>, vector<2x8x32xf32>
    %4 = vector.shape_cast %3 : vector<2x8x32xf32> to vector<16x32xf32>
    %c0_3 = arith.constant 0 : index
    %c0_4 = arith.constant 0 : index
    %c0_5 = arith.constant 0 : index
    %5 = vector.load %arg7[%c0_3, %c0_4, %c0_5] : memref<1x1x32xf32, #tpu.memory_space<vmem>>, vector<1x1x32xf32>
    %6 = vector.shape_cast %5 : vector<1x1x32xf32> to vector<1x32xf32>
    %c0_6 = arith.constant 0 : index
    %c0_7 = arith.constant 0 : index
    %c0_8 = arith.constant 0 : index
    %7 = vector.load %arg8[%c0_6, %c0_7, %c0_8] : memref<1x1x32xf32, #tpu.memory_space<vmem>>, vector<1x1x32xf32>
    %8 = vector.shape_cast %7 : vector<1x1x32xf32> to vector<1x32xf32>
    %cst = arith.constant dense<0.000000e+00> : vector<16xf32>
    %9 = vector.multi_reduction <add>, %4, %cst [1] : vector<16x32xf32> to vector<16xf32>
    %10 = vector.shape_cast %9 : vector<16xf32> to vector<16x1xf32>
    %cst_9 = arith.constant 3.200000e+01 : f32
    %11 = vector.broadcast %cst_9 : f32 to vector<16x1xf32>
    %12 = arith.divf %10, %11 : vector<16x1xf32>
    %13 = vector.broadcast %12 : vector<16x1xf32> to vector<16x32xf32>
    %14 = arith.subf %4, %13 : vector<16x32xf32>
    %15 = arith.mulf %14, %14 : vector<16x32xf32>
    %cst_10 = arith.constant dense<0.000000e+00> : vector<16xf32>
    %16 = vector.multi_reduction <add>, %15, %cst_10 [1] : vector<16x32xf32> to vector<16xf32>
    %17 = vector.shape_cast %16 : vector<16xf32> to vector<16x1xf32>
    %cst_11 = arith.constant 3.200000e+01 : f32
    %18 = vector.broadcast %cst_11 : f32 to vector<16x1xf32>
    %19 = arith.divf %17, %18 : vector<16x1xf32>
    %20 = vector.broadcast %12 : vector<16x1xf32> to vector<16x32xf32>
    %21 = arith.subf %4, %20 : vector<16x32xf32>
    %cst_12 = arith.constant 9.99999974E-6 : f32
    %22 = vector.broadcast %cst_12 : f32 to vector<16x1xf32>
    %23 = arith.addf %19, %22 : vector<16x1xf32>
    %24 = math.rsqrt %23 : vector<16x1xf32>
    %25 = vector.broadcast %24 : vector<16x1xf32> to vector<16x32xf32>
    %26 = arith.mulf %21, %25 : vector<16x32xf32>
    %27 = vector.broadcast %6 : vector<1x32xf32> to vector<16x32xf32>
    %28 = arith.mulf %26, %27 : vector<16x32xf32>
    %29 = vector.broadcast %8 : vector<1x32xf32> to vector<16x32xf32>
    %30 = arith.addf %28, %29 : vector<16x32xf32>
    %c0_13 = arith.constant 0 : index
    %c0_14 = arith.constant 0 : index
    %c0_15 = arith.constant 0 : index
    %31 = vector.load %arg3[%c0_13, %c0_14, %c0_15] : memref<1x32x96xf32, #tpu.memory_space<vmem>>, vector<1x32x96xf32>
    %32 = vector.shape_cast %31 : vector<1x32x96xf32> to vector<32x96xf32>
    %cst_16 = arith.constant dense<0.000000e+00> : vector<16x96xf32>
    %33 = tpu.matmul %30, %32, %cst_16 {dimension_numbers = #tpu.dot_dimension_numbers<[1], [0], [0], [1], [0, 0, 1, 1], [], []>} : vector<16x32xf32>, vector<32x96xf32>, vector<16x96xf32> -> vector<16x96xf32>
    %c0_17 = arith.constant 0 : index
    %c0_18 = arith.constant 0 : index
    %c0_19 = arith.constant 0 : index
    %34 = vector.load %arg4[%c0_17, %c0_18, %c0_19] : memref<1x1x96xf32, #tpu.memory_space<vmem>>, vector<1x1x96xf32>
    %35 = vector.shape_cast %34 : vector<1x1x96xf32> to vector<1x96xf32>
    %36 = vector.broadcast %35 : vector<1x96xf32> to vector<16x96xf32>
    %37 = arith.addf %33, %36 : vector<16x96xf32>
    %38 = vector.extract_strided_slice %37 {offsets = [0, 0], sizes = [16, 32], strides = [1, 1]} : vector<16x96xf32> to vector<16x32xf32>
    %39 = vector.shape_cast %38 : vector<16x32xf32> to vector<2x8x32xf32>
    %40 = vector.extract_strided_slice %39 {offsets = [0, 0, 0], sizes = [2, 8, 8], strides = [1, 1, 1]} : vector<2x8x32xf32> to vector<2x8x8xf32>
    %41 = vector.extract_strided_slice %39 {offsets = [0, 0, 8], sizes = [2, 8, 8], strides = [1, 1, 1]} : vector<2x8x32xf32> to vector<2x8x8xf32>
    %42 = vector.extract_strided_slice %39 {offsets = [0, 0, 16], sizes = [2, 8, 8], strides = [1, 1, 1]} : vector<2x8x32xf32> to vector<2x8x8xf32>
    %43 = vector.extract_strided_slice %39 {offsets = [0, 0, 24], sizes = [2, 8, 8], strides = [1, 1, 1]} : vector<2x8x32xf32> to vector<2x8x8xf32>
    %44 = tpu.concatenate %40, %41, %42, %43 in 0 : vector<2x8x8xf32>, vector<2x8x8xf32>, vector<2x8x8xf32>, vector<2x8x8xf32> -> vector<8x8x8xf32>
    %45 = vector.extract_strided_slice %37 {offsets = [0, 32], sizes = [16, 32], strides = [1, 1]} : vector<16x96xf32> to vector<16x32xf32>
    %46 = vector.shape_cast %45 : vector<16x32xf32> to vector<2x8x32xf32>
    %47 = vector.extract_strided_slice %46 {offsets = [0, 0, 0], sizes = [2, 8, 8], strides = [1, 1, 1]} : vector<2x8x32xf32> to vector<2x8x8xf32>
    %48 = vector.extract_strided_slice %46 {offsets = [0, 0, 8], sizes = [2, 8, 8], strides = [1, 1, 1]} : vector<2x8x32xf32> to vector<2x8x8xf32>
    %49 = vector.extract_strided_slice %46 {offsets = [0, 0, 16], sizes = [2, 8, 8], strides = [1, 1, 1]} : vector<2x8x32xf32> to vector<2x8x8xf32>
    %50 = vector.extract_strided_slice %46 {offsets = [0, 0, 24], sizes = [2, 8, 8], strides = [1, 1, 1]} : vector<2x8x32xf32> to vector<2x8x8xf32>
    %51 = tpu.concatenate %47, %48, %49, %50 in 0 : vector<2x8x8xf32>, vector<2x8x8xf32>, vector<2x8x8xf32>, vector<2x8x8xf32> -> vector<8x8x8xf32>
    %52 = vector.extract_strided_slice %37 {offsets = [0, 64], sizes = [16, 32], strides = [1, 1]} : vector<16x96xf32> to vector<16x32xf32>
    %53 = vector.shape_cast %52 : vector<16x32xf32> to vector<2x8x32xf32>
    %54 = vector.extract_strided_slice %53 {offsets = [0, 0, 0], sizes = [2, 8, 8], strides = [1, 1, 1]} : vector<2x8x32xf32> to vector<2x8x8xf32>
    %55 = vector.extract_strided_slice %53 {offsets = [0, 0, 8], sizes = [2, 8, 8], strides = [1, 1, 1]} : vector<2x8x32xf32> to vector<2x8x8xf32>
    %56 = vector.extract_strided_slice %53 {offsets = [0, 0, 16], sizes = [2, 8, 8], strides = [1, 1, 1]} : vector<2x8x32xf32> to vector<2x8x8xf32>
    %57 = vector.extract_strided_slice %53 {offsets = [0, 0, 24], sizes = [2, 8, 8], strides = [1, 1, 1]} : vector<2x8x32xf32> to vector<2x8x8xf32>
    %58 = tpu.concatenate %54, %55, %56, %57 in 0 : vector<2x8x8xf32>, vector<2x8x8xf32>, vector<2x8x8xf32>, vector<2x8x8xf32> -> vector<8x8x8xf32>
    "tpu.trace_start"() <{level = 10 : i32, message = "bqd,bkd->bqk"}> : () -> ()
    %cst_20 = arith.constant dense<0.000000e+00> : vector<8x8x8xf32>
    %59 = tpu.matmul %44, %51, %cst_20 {dimension_numbers = #tpu.dot_dimension_numbers<[2], [2], [1], [1], [0, 0, 0, 1, 1, 1], [0], [0]>} : vector<8x8x8xf32>, vector<8x8x8xf32>, vector<8x8x8xf32> -> vector<8x8x8xf32>
    "tpu.trace_stop"() : () -> ()
    %cst_21 = arith.constant 0.353553385 : f32
    %60 = vector.broadcast %cst_21 : f32 to vector<8x8x8xf32>
    %61 = arith.mulf %59, %60 : vector<8x8x8xf32>
    %cst_22 = arith.constant dense<0xFF800000> : vector<8x8xf32>
    %62 = vector.multi_reduction <maximumf>, %61, %cst_22 [2] : vector<8x8x8xf32> to vector<8x8xf32>
    %63 = vector.shape_cast %62 : vector<8x8xf32> to vector<8x8x1xf32>
    %64 = vector.broadcast %63 : vector<8x8x1xf32> to vector<8x8x8xf32>
    %65 = arith.subf %61, %64 : vector<8x8x8xf32>
    %66 = math.exp %65 : vector<8x8x8xf32>
    %cst_23 = arith.constant dense<0.000000e+00> : vector<8x8xf32>
    %67 = vector.multi_reduction <add>, %66, %cst_23 [2] : vector<8x8x8xf32> to vector<8x8xf32>
    %68 = vector.shape_cast %67 : vector<8x8xf32> to vector<8x8x1xf32>
    %69 = vector.broadcast %68 : vector<8x8x1xf32> to vector<8x8x8xf32>
    %70 = arith.divf %66, %69 : vector<8x8x8xf32>
    "tpu.trace_start"() <{level = 10 : i32, message = "bqk,bkd->bqd"}> : () -> ()
    %cst_24 = arith.constant dense<0.000000e+00> : vector<8x8x8xf32>
    %71 = tpu.matmul %70, %58, %cst_24 {dimension_numbers = #tpu.dot_dimension_numbers<[2], [1], [1], [2], [0, 0, 0, 1, 1, 2], [0], [0]>} : vector<8x8x8xf32>, vector<8x8x8xf32>, vector<8x8x8xf32> -> vector<8x8x8xf32>
    "tpu.trace_stop"() : () -> ()
    %72 = vector.extract_strided_slice %71 {offsets = [0, 0, 0], sizes = [2, 8, 8], strides = [1, 1, 1]} : vector<8x8x8xf32> to vector<2x8x8xf32>
    %73 = vector.extract_strided_slice %71 {offsets = [2, 0, 0], sizes = [2, 8, 8], strides = [1, 1, 1]} : vector<8x8x8xf32> to vector<2x8x8xf32>
    %74 = vector.extract_strided_slice %71 {offsets = [4, 0, 0], sizes = [2, 8, 8], strides = [1, 1, 1]} : vector<8x8x8xf32> to vector<2x8x8xf32>
    %75 = vector.extract_strided_slice %71 {offsets = [6, 0, 0], sizes = [2, 8, 8], strides = [1, 1, 1]} : vector<8x8x8xf32> to vector<2x8x8xf32>
    %76 = tpu.concatenate %72, %73, %74, %75 in 2 : vector<2x8x8xf32>, vector<2x8x8xf32>, vector<2x8x8xf32>, vector<2x8x8xf32> -> vector<2x8x32xf32>
    %77 = vector.shape_cast %76 : vector<2x8x32xf32> to vector<16x32xf32>
    %c0_25 = arith.constant 0 : index
    %c0_26 = arith.constant 0 : index
    %c0_27 = arith.constant 0 : index
    %78 = vector.load %arg5[%c0_25, %c0_26, %c0_27] : memref<1x32x32xf32, #tpu.memory_space<vmem>>, vector<1x32x32xf32>
    %79 = vector.shape_cast %78 : vector<1x32x32xf32> to vector<32x32xf32>
    %cst_28 = arith.constant dense<0.000000e+00> : vector<16x32xf32>
    %80 = tpu.matmul %77, %79, %cst_28 {dimension_numbers = #tpu.dot_dimension_numbers<[1], [0], [0], [1], [0, 0, 1, 1], [], []>} : vector<16x32xf32>, vector<32x32xf32>, vector<16x32xf32> -> vector<16x32xf32>
    %c0_29 = arith.constant 0 : index
    %c0_30 = arith.constant 0 : index
    %c0_31 = arith.constant 0 : index
    %81 = vector.load %arg6[%c0_29, %c0_30, %c0_31] : memref<1x1x32xf32, #tpu.memory_space<vmem>>, vector<1x1x32xf32>
    %82 = vector.shape_cast %81 : vector<1x1x32xf32> to vector<1x32xf32>
    %83 = vector.broadcast %82 : vector<1x32xf32> to vector<16x32xf32>
    %84 = arith.addf %80, %83 : vector<16x32xf32>
    %85 = arith.addf %4, %84 : vector<16x32xf32>
    %c0_32 = arith.constant 0 : index
    %c0_33 = arith.constant 0 : index
    %c0_34 = arith.constant 0 : index
    %86 = vector.load %arg9[%c0_32, %c0_33, %c0_34] : memref<1x1x32xf32, #tpu.memory_space<vmem>>, vector<1x1x32xf32>
    %87 = vector.shape_cast %86 : vector<1x1x32xf32> to vector<1x32xf32>
    %c0_35 = arith.constant 0 : index
    %c0_36 = arith.constant 0 : index
    %c0_37 = arith.constant 0 : index
    %88 = vector.load %arg10[%c0_35, %c0_36, %c0_37] : memref<1x1x32xf32, #tpu.memory_space<vmem>>, vector<1x1x32xf32>
    %89 = vector.shape_cast %88 : vector<1x1x32xf32> to vector<1x32xf32>
    %cst_38 = arith.constant dense<0.000000e+00> : vector<16xf32>
    %90 = vector.multi_reduction <add>, %85, %cst_38 [1] : vector<16x32xf32> to vector<16xf32>
    %91 = vector.shape_cast %90 : vector<16xf32> to vector<16x1xf32>
    %cst_39 = arith.constant 3.200000e+01 : f32
    %92 = vector.broadcast %cst_39 : f32 to vector<16x1xf32>
    %93 = arith.divf %91, %92 : vector<16x1xf32>
    %94 = vector.broadcast %93 : vector<16x1xf32> to vector<16x32xf32>
    %95 = arith.subf %85, %94 : vector<16x32xf32>
    %96 = arith.mulf %95, %95 : vector<16x32xf32>
    %cst_40 = arith.constant dense<0.000000e+00> : vector<16xf32>
    %97 = vector.multi_reduction <add>, %96, %cst_40 [1] : vector<16x32xf32> to vector<16xf32>
    %98 = vector.shape_cast %97 : vector<16xf32> to vector<16x1xf32>
    %cst_41 = arith.constant 3.200000e+01 : f32
    %99 = vector.broadcast %cst_41 : f32 to vector<16x1xf32>
    %100 = arith.divf %98, %99 : vector<16x1xf32>
    %101 = vector.broadcast %93 : vector<16x1xf32> to vector<16x32xf32>
    %102 = arith.subf %85, %101 : vector<16x32xf32>
    %cst_42 = arith.constant 9.99999974E-6 : f32
    %103 = vector.broadcast %cst_42 : f32 to vector<16x1xf32>
    %104 = arith.addf %100, %103 : vector<16x1xf32>
    %105 = math.rsqrt %104 : vector<16x1xf32>
    %106 = vector.broadcast %105 : vector<16x1xf32> to vector<16x32xf32>
    %107 = arith.mulf %102, %106 : vector<16x32xf32>
    %108 = vector.broadcast %87 : vector<1x32xf32> to vector<16x32xf32>
    %109 = arith.mulf %107, %108 : vector<16x32xf32>
    %110 = vector.broadcast %89 : vector<1x32xf32> to vector<16x32xf32>
    %111 = arith.addf %109, %110 : vector<16x32xf32>
    %c0_43 = arith.constant 0 : index
    %c0_44 = arith.constant 0 : index
    %c0_45 = arith.constant 0 : index
    %112 = vector.load %arg11[%c0_43, %c0_44, %c0_45] : memref<1x32x64xf32, #tpu.memory_space<vmem>>, vector<1x32x64xf32>
    %113 = vector.shape_cast %112 : vector<1x32x64xf32> to vector<32x64xf32>
    %cst_46 = arith.constant dense<0.000000e+00> : vector<16x64xf32>
    %114 = tpu.matmul %111, %113, %cst_46 {dimension_numbers = #tpu.dot_dimension_numbers<[1], [0], [0], [1], [0, 0, 1, 1], [], []>} : vector<16x32xf32>, vector<32x64xf32>, vector<16x64xf32> -> vector<16x64xf32>
    %c0_47 = arith.constant 0 : index
    %c0_48 = arith.constant 0 : index
    %c0_49 = arith.constant 0 : index
    %115 = vector.load %arg12[%c0_47, %c0_48, %c0_49] : memref<1x1x64xf32, #tpu.memory_space<vmem>>, vector<1x1x64xf32>
    %116 = vector.shape_cast %115 : vector<1x1x64xf32> to vector<1x64xf32>
    %117 = vector.broadcast %116 : vector<1x64xf32> to vector<16x64xf32>
    %118 = arith.addf %114, %117 : vector<16x64xf32>
    %cst_50 = arith.constant 5.000000e-01 : f32
    %119 = vector.broadcast %cst_50 : f32 to vector<16x64xf32>
    %120 = arith.mulf %119, %118 : vector<16x64xf32>
    %121 = arith.mulf %118, %118 : vector<16x64xf32>
    %122 = arith.mulf %121, %118 : vector<16x64xf32>
    %cst_51 = arith.constant 4.471500e-02 : f32
    %123 = vector.broadcast %cst_51 : f32 to vector<16x64xf32>
    %124 = arith.mulf %123, %122 : vector<16x64xf32>
    %125 = arith.addf %118, %124 : vector<16x64xf32>
    %cst_52 = arith.constant 0.797884583 : f32
    %126 = vector.broadcast %cst_52 : f32 to vector<16x64xf32>
    %127 = arith.mulf %126, %125 : vector<16x64xf32>
    %128 = math.tanh %127 : vector<16x64xf32>
    %cst_53 = arith.constant 1.000000e+00 : f32
    %129 = vector.broadcast %cst_53 : f32 to vector<16x64xf32>
    %130 = arith.addf %129, %128 : vector<16x64xf32>
    %131 = arith.mulf %120, %130 : vector<16x64xf32>
    %c0_54 = arith.constant 0 : index
    %c0_55 = arith.constant 0 : index
    %c0_56 = arith.constant 0 : index
    %132 = vector.load %arg13[%c0_54, %c0_55, %c0_56] : memref<1x64x32xf32, #tpu.memory_space<vmem>>, vector<1x64x32xf32>
    %133 = vector.shape_cast %132 : vector<1x64x32xf32> to vector<64x32xf32>
    %cst_57 = arith.constant dense<0.000000e+00> : vector<16x32xf32>
    %134 = tpu.matmul %131, %133, %cst_57 {dimension_numbers = #tpu.dot_dimension_numbers<[1], [0], [0], [1], [0, 0, 1, 1], [], []>} : vector<16x64xf32>, vector<64x32xf32>, vector<16x32xf32> -> vector<16x32xf32>
    %c0_58 = arith.constant 0 : index
    %c0_59 = arith.constant 0 : index
    %c0_60 = arith.constant 0 : index
    %135 = vector.load %arg14[%c0_58, %c0_59, %c0_60] : memref<1x1x32xf32, #tpu.memory_space<vmem>>, vector<1x1x32xf32>
    %136 = vector.shape_cast %135 : vector<1x1x32xf32> to vector<1x32xf32>
    %137 = vector.broadcast %136 : vector<1x32xf32> to vector<16x32xf32>
    %138 = arith.addf %134, %137 : vector<16x32xf32>
    %139 = arith.addf %85, %138 : vector<16x32xf32>
    %140 = vector.shape_cast %139 : vector<16x32xf32> to vector<2x8x32xf32>
    %c0_61 = arith.constant 0 : index
    %c0_62 = arith.constant 0 : index
    %c0_63 = arith.constant 0 : index
    %141 = vector.load %arg15[%c0_61, %c0_62, %c0_63] : memref<2x8x32xf32, #tpu.memory_space<vmem>>, vector<2x8x32xf32>
    tpu.vector_store %arg15[%c0_61, %c0_62, %c0_63], %140 {strides = array<i32>} : memref<2x8x32xf32, #tpu.memory_space<vmem>>, vector<2x8x32xf32>,
    return
  }
  func.func @transform_0(%arg0: i32, %arg1: i32) -> (i32, i32, i32) {
    %c0_i32 = arith.constant 0 : i32
    %c0_i32_0 = arith.constant 0 : i32
    %c0_i32_1 = arith.constant 0 : i32
    return %arg0, %c0_i32, %c0_i32_0 : i32, i32, i32
  }
  func.func @transform_1(%arg0: i32, %arg1: i32) -> (i32, i32, i32) {
    %c0_i32 = arith.constant 0 : i32
    %c0_i32_0 = arith.constant 0 : i32
    %c0_i32_1 = arith.constant 0 : i32
    return %arg1, %c0_i32, %c0_i32_0 : i32, i32, i32
  }
  func.func @transform_2(%arg0: i32, %arg1: i32) -> (i32, i32, i32) {
    %c0_i32 = arith.constant 0 : i32
    %c0_i32_0 = arith.constant 0 : i32
    %c0_i32_1 = arith.constant 0 : i32
    return %arg1, %c0_i32, %c0_i32_0 : i32, i32, i32
  }
  func.func @transform_3(%arg0: i32, %arg1: i32) -> (i32, i32, i32) {
    %c0_i32 = arith.constant 0 : i32
    %c0_i32_0 = arith.constant 0 : i32
    %c0_i32_1 = arith.constant 0 : i32
    return %arg1, %c0_i32, %c0_i32_0 : i32, i32, i32
  }
  func.func @transform_4(%arg0: i32, %arg1: i32) -> (i32, i32, i32) {
    %c0_i32 = arith.constant 0 : i32
    %c0_i32_0 = arith.constant 0 : i32
    %c0_i32_1 = arith.constant 0 : i32
    return %arg1, %c0_i32, %c0_i32_0 : i32, i32, i32
  }
  func.func @transform_5(%arg0: i32, %arg1: i32) -> (i32, i32, i32) {
    %c0_i32 = arith.constant 0 : i32
    %c0_i32_0 = arith.constant 0 : i32
    %c0_i32_1 = arith.constant 0 : i32
    return %arg1, %c0_i32, %c0_i32_0 : i32, i32, i32
  }
  func.func @transform_6(%arg0: i32, %arg1: i32) -> (i32, i32, i32) {
    %c0_i32 = arith.constant 0 : i32
    %c0_i32_0 = arith.constant 0 : i32
    %c0_i32_1 = arith.constant 0 : i32
    return %arg1, %c0_i32, %c0_i32_0 : i32, i32, i32
  }
  func.func @transform_7(%arg0: i32, %arg1: i32) -> (i32, i32, i32) {
    %c0_i32 = arith.constant 0 : i32
    %c0_i32_0 = arith.constant 0 : i32
    %c0_i32_1 = arith.constant 0 : i32
    return %arg1, %c0_i32, %c0_i32_0 : i32, i32, i32
  }
  func.func @transform_8(%arg0: i32, %arg1: i32) -> (i32, i32, i32) {
    %c0_i32 = arith.constant 0 : i32
    %c0_i32_0 = arith.constant 0 : i32
    %c0_i32_1 = arith.constant 0 : i32
    return %arg1, %c0_i32, %c0_i32_0 : i32, i32, i32
  }
  func.func @transform_9(%arg0: i32, %arg1: i32) -> (i32, i32, i32) {
    %c0_i32 = arith.constant 0 : i32
    %c0_i32_0 = arith.constant 0 : i32
    %c0_i32_1 = arith.constant 0 : i32
    return %arg1, %c0_i32, %c0_i32_0 : i32, i32, i32
  }
  func.func @transform_10(%arg0: i32, %arg1: i32) -> (i32, i32, i32) {
    %c0_i32 = arith.constant 0 : i32
    %c0_i32_0 = arith.constant 0 : i32
    %c0_i32_1 = arith.constant 0 : i32
    return %arg1, %c0_i32, %c0_i32_0 : i32, i32, i32
  }
  func.func @transform_11(%arg0: i32, %arg1: i32) -> (i32, i32, i32) {
    %c0_i32 = arith.constant 0 : i32
    %c0_i32_0 = arith.constant 0 : i32
    %c0_i32_1 = arith.constant 0 : i32
    return %arg1, %c0_i32, %c0_i32_0 : i32, i32, i32
  }
  func.func @transform_12(%arg0: i32, %arg1: i32) -> (i32, i32, i32) {
    %c0_i32 = arith.constant 0 : i32
    %c0_i32_0 = arith.constant 0 : i32
    %c0_i32_1 = arith.constant 0 : i32
    return %arg1, %c0_i32, %c0_i32_0 : i32, i32, i32
  }
  func.func @transform_13(%arg0: i32, %arg1: i32) -> (i32, i32, i32) {
    %c0_i32 = arith.constant 0 : i32
    %c0_i32_0 = arith.constant 0 : i32
    %c0_i32_1 = arith.constant 0 : i32
    return %arg0, %c0_i32, %c0_i32_0 : i32, i32, i32
  }
}

</mosaic_0001>

<bundles_post_ra>
// kernel: tpu_custom_call.1
= control target key start
LH: loop header
LB: loop body
LE: loop exit
PB: predicated region body
PF: predicated region fallthrough
CT: control target
= control target key end

     0   :  { %s3663_s0 = inlined_call_operand.hbm [shape: f32[2,8,32], index: 0, kind: input, shape index: {}]   ;;  %s3664_s1 = inlined_call_operand.vmem [shape: f32[2,32,96], index: 1, kind: input, shape index: {}]   ;;  %s3665_s2 = inlined_call_operand.vmem [shape: f32[2,1,96], index: 2, kind: input, shape index: {}]   ;;  %s3666_s3 = inlined_call_operand.vmem [shape: f32[2,32,32], index: 3, kind: input, shape index: {}]   ;;  %s3667_s4 = inlined_call_operand.vmem [shape: f32[2,1,32], index: 4, kind: input, shape index: {}]   ;;  %s3668_s5 = inlined_call_operand.vmem [shape: f32[2,1,32], index: 5, kind: input, shape index: {}]   ;;  %s3669_s6 = inlined_call_operand.vmem [shape: f32[2,1,32], index: 6, kind: input, shape index: {}]   ;;  %s3670_s7 = inlined_call_operand.vmem [shape: f32[2,1,32], index: 7, kind: input, shape index: {}]   ;;  %s3671_s8 = inlined_call_operand.vmem [shape: f32[2,1,32], index: 8, kind: input, shape index: {}]   ;;  %s3672_s9 = inlined_call_operand.vmem [shape: f32[2,32,64], index: 9, kind: input, shape index: {}]   ;;  %s3673_s10 = inlined_call_operand.vmem [shape: f32[2,1,64], index: 10, kind: input, shape index: {}]   ;;  %s3674_s11 = inlined_call_operand.vmem [shape: f32[2,64,32], index: 11, kind: input, shape index: {}]   ;;  %s3675_s12 = inlined_call_operand.vmem [shape: f32[2,1,32], index: 12, kind: input, shape index: {}]   ;;  %s3676_s13 = inlined_call_operand.hbm [shape: f32[2,8,32], index: 13, kind: output, shape index: {}]  }
   0x1   :  { %3685 = sst [smem:[#allocation12_spill]] %s3663_s0 }
   0x2   :  { %3686 = sst [smem:[#allocation13_spill]] %s3664_s1 }
   0x3   :  { %3687 = sst [smem:[#allocation14_spill]] %s3666_s3 }
   0x4   :  { %3688 = sst [smem:[#allocation15_spill]] %s3676_s13 }
   0x5   :  { %18 = vsyncpa [#allocation3], 0 }
   0x6   :  { %19 = vsyncpa [#allocation4], 0  ;;  %s3247_s25 = smov 0   ;;  %s3249_s26 = smov 0  }
   0x7   :  { %s3251_s27 = smov 0  }
   0x8 LB: > { %3689 = sst [smem:[#allocation8_spill]] %s3156_s26  ;;  %s3680_s28 = sadd.s32 4294967295, %s3160_s27   ;;  %s3160_s27 = sphi %s3251_s27, %s25_s27   ;;  %s3156_s26 = sphi %s3249_s26, %s3712_s26   ;;  %s3152_s25 = sphi %s3247_s25, %s3711_s25  }
   0x9   : > { %3690 = sst [smem:[#allocation9_spill]] %s3160_s27  ;;  %s34_s29 = sadd.s32 1, %s3156_s26 }
   0xa   : > { %p35_p0 = scmp.ge.s32.totalorder %s34_s29, 2  ;;  %p2683_p1 = scmp.ge.s32.totalorder %s3160_s27, 1 }
   0xb   : > { %p406_p2 = scmp.lt.s32.totalorder %s3160_s27, 3  ;;  %p3274_p4 = scmp.eq.s32.totalorder %s3680_s28, 0 }
   0xc   : > { %s3714_s29 = smov (%p35_p0, %s34_s29), 0  ;;  %s3162_s15 = smov [#allocation2]  }
   0xd   : > { %3691 = sst [smem:[#allocation10_spill]] %s3714_s29  ;;  %p3268_p3 = pnand %p2683_p1, %p406_p2 }
   0xe   : > { %s3693_s14 = scalar_select %p3274_p4, 1, 0 }
   0xf   : > { %s3692_s30 = scalar_select %p3268_p3, 1, 0 }
  0x10   : > { %p2985_p5 = pneg %p3268_p3  ;;  %s421_s16 = sshll.u32 %s3162_s15, 4  ;;  %s422_s16 = int_to_ptr.vmem [resolvable:$true] %s421_s16 }
  0x11   : > { %s3695_s0 = sld [smem:[#allocation12_spill]] }
  0x12   : > { %p3282_p6 = pnand %p3274_p4, %p2985_p5 }
  0x14   : > { %p3078_p8 = pneg %p3282_p6 }
  0x17   : > { %s3076_s20 = scalar_lea.hbm %s3695_s0, 256 }
  0x18   : > { %p3077_p7 = scmp.ne.s32.totalorder %s3695_s0, %s3076_s20  ;;  %p3083_p11 = scmp.lt.u32.totalorder %s3076_s20, %s3695_s0 }
  0x1a   : > { %p3079_p9 = pnand %p3078_p8, %p3077_p7 }
  0x1c   : > { %p3080_p10 = pneg %p3079_p9 }
  0x1e   : > { %p3085_p12 = pnand %p3083_p11, %p3080_p10 }
  0x20   : > { %3088 = shalt.err (!%p3085_p12)
}
  0x21   : > { %s3089_s15 = scalar_lea.vmem %s422_s16, 256  ;;  %p3097_p2 = scmp.lt.s32.totalorder %s422_s16, %s422_s16 }
  0x22   : > { %p3090_p13 = scmp.ne.s32.totalorder %s422_s16, %s3089_s15  ;;  %p3098_p5 = scmp.lt.s32.totalorder %s3089_s15, %s3089_s15 }
  0x24   : > { %p3092_p0 = pnand %p3090_p13, %p3078_p8  ;;  %p3099_p4 = por %p3098_p5, %p3097_p2 }
  0x26   : > { %p3093_p1 = pneg %p3092_p0 }
  0x28   : > { %p3100_p3 = pnand %p3099_p4, %p3093_p1 }
  0x2a   : > { %3103 = shalt.err (!%p3100_p3)
}
  0x2b   : > { %s3163_s18 = smov 128   ;;  %s3164_s19 = smov 8  }
  0x2c   : > { %2988 = dma.hbm_to_vmem [thread:$0]  (!%p3282_p6), %s3695_s0, 256, %s422_s16, [#allocation3], %s3163_s18, %s3163_s18, %s3164_s19  }
  0x2d   : > { %p3696_p7 = scmp.ne.s32.totalorder %s3692_s30, 0 }
  0x2f   : > { %517 = sbr.rel (%p3696_p7) target bundleno = 2717 (0xa9d), region = 72 }
  0x36   : > { %p3697_p9 = scmp.ne.s32.totalorder %s3693_s14, 0 }
  0x38   : > { %3143 = dma.done.wait (%p3697_p9), [#allocation3], 256  }
  0x39   : > { %3145 = vsyncadd (%p3697_p9), [#allocation3], 4294967040  ;;  %p596_p3 = scmp.lt.s32.totalorder %s3152_s25, 1  ;;  %s3698_s1 = sld [smem:[#allocation13_spill]] }
  0x3a   : > { %s3699_s3 = sld [smem:[#allocation14_spill]]  ;;  %p2696_p4 = scmp.ne.s32.totalorder %s3152_s25, 0 }
  0x3b   : > { %s3310_s20 = scalar_select %p596_p3, %s3152_s25, 1 }
  0x3c   : > { %644 = sbr.rel (%p2696_p4) target bundleno = 67 (0x43), region = 80  ;;  %v645_v0 = vld [vmem:[#allocation2] sm:$0xff] (!%p2696_p4)  ;;  %vm647_vm0 = vcmask (!%p2696_p4), 261120   ;;  %v646_v1 = vld [vmem:[#allocation2 + $0x8] sm:$0xff] (!%p2696_p4) }
  0x3d   : > { %s2741_s30 = sshll.u32 %s3310_s20, 5  ;;  %s614_s13 = scalar_lea.vmem %s3668_s5, %s3310_s20  ;;  %648 = vst.msk [vmem:[#allocation5] sm:$0xff] (!%p2696_p4), %vm647_vm0, %v645_v0  ;;  %649 = vst.msk [vmem:[#allocation5 + $0x8] sm:$0xff] (!%p2696_p4), %vm647_vm0, %v646_v1 }
  0x3e   : > { %s623_s19 = scalar_lea.vmem %s3671_s8, %s3310_s20  ;;  %s3350_s28 = scalar_lea.vmem %s3672_s9, %s2741_s30 }
  0x3f   : > { %s3320_s15 = scalar_lea.vmem %s3698_s1, %s2741_s30  ;;  %s620_s1 = scalar_lea.vmem %s3670_s7, %s3310_s20 }
  0x40   : > { %s3325_s21 = scalar_lea.vmem %s3699_s3, %s2741_s30  ;;  %s631_s29 = scalar_lea.vmem %s3673_s10, %s3310_s20 }
  0x41   : > { %3700 = sst [smem:[#allocation11_spill]] %s3325_s21  ;;  %s2744_s0 = sshll.u32 %s3310_s20, 6 }
  0x42   : > { %s3360_s14 = scalar_lea.vmem %s3674_s11, %s2744_s0  ;;  %s639_s27 = scalar_lea.vmem %s3675_s12, %s3310_s20 }
  0x43 PF: > { %vm654_vm1 = vcmask 261120   ;;  %v698_v16 = vld [vmem:[%s3320_s15] sm:$0xff]  ;;  %v699_v17 = vld [vmem:[%s3320_s15 + $0x8] sm:$0xff]  ;;  %v700_v18 = vld [vmem:[%s3320_s15 + $0x10] sm:$0xff]  ;;  %v3165_v39 = vmov 0.0   ;;  %vm3166_vm2 = vmmov 0   ;;  %s3704_s21 = scalar_lea.vmem %s3667_s4, %s3310_s20 }
  0x44   : > { %v3367_v2 = vld [vmem:[#allocation5] sm:$0xff]  ;;  %v3369_v3 = vld [vmem:[#allocation5 + $0x8] sm:$0xff]  ;;  %v2937_v19 = vpack.c.bf16 %v699_v17, %v698_v16  ;;  %v2697_v29 = vld [vmem:[%s614_s13] ss:$0 sm:$0xff]  ;;  %s3702_s13 = scalar_lea.vmem %s3665_s2, %s3310_s20  ;;  %2826 = vmatprep.subr.mxu0 %v3165_v39  ;;  %2828 = vmatprep.mubr.msk.f32.mxu0 %vm3166_vm2, %v3165_v39  ;;  %s3167_s22 = smov 120   ;;  %vm806_vm3 = vcmask 64512  }
  0x45   : > { %v655_v4 = vsel %vm654_vm1, %v3367_v2, 0.0  ;;  %v658_v5 = vsel %vm654_vm1, %v3369_v3, 0.0  ;;  %v701_v20 = vld [vmem:[%s3320_s15 + $0x18] sm:$0xff]  ;;  %s3701_s15 = scalar_lea.vmem %s3669_s6, %s3310_s20  ;;  %v2699_v38 = vld [vmem:[%s3702_s13] ss:$0 sm:$0xff]  ;;  %s3168_s26 = smov 112  }
  0x46   : > { %656 = vadd.xlane.f32.xlu0 %v655_v4  ;;  %v2941_v21 = vpack.c.bf16 %v701_v20, %v700_v18  ;;  %2938 = vmatprep.subr.bf16.mxu1 %v2937_v19  ;;  %v2698_v31 = vld [vmem:[%s3701_s15] ss:$0 sm:$0xff]  ;;  %s3169_s16 = smov 104   ;;  %s3170_s17 = smov 96   ;;  %vm2143_vm4 = vcmask 130048   ;;  %vm2146_vm5 = vcmask 195584  }
  0x47   : > { %2940 = vmatpush3.bf16.msra.mxu1 %v2937_v19  ;;  %s3171_s23 = smov 64   ;;  %s3703_s24 = sld [smem:[#allocation11_spill]]  ;;  %vm2412_vm6 = vcmask 523264  }
  0x48   : > { %2942 = vmatprep.subr.bf16.mxu1 %v2941_v21  ;;  %s3172_s0 = smov 8   ;;  %s3173_s3 = smov 16  }
  0x49   : > { %s3174_s25 = smov 24  }
  0x4a   : > { %659 = vadd.xlane.f32.xlu0 %v658_v5 }
  0x4b   : > { %2944 = vmatpush3.bf16.msra.mxu1 %v2941_v21 }
  0x4c   : > { %2816 = vmatprep.subr.mxu1 %v3165_v39 }
  0xd3   : > { %v657_v6 = vpop.xlane.xlu0 %656 }
  0xd4   : > { %v662_v7 = vmul.f32 0.03125, %v657_v6 }
  0xd6   : > { %v664_v8 = vsub.f32 %v3367_v2, %v662_v7 }
  0xd7   : > { %v660_v9 = vpop.xlane.xlu0 %659 }
  0xd8   : > { %v663_v10 = vmul.f32 0.03125, %v660_v9  ;;  %v666_v11 = vmul.f32 %v664_v8, %v664_v8 }
  0xda   : > { %v665_v12 = vsub.f32 %v3369_v3, %v663_v10  ;;  %v668_v13 = vsel %vm654_vm1, %v666_v11, 0.0 }
  0xdb   : > { %669 = vadd.xlane.f32.xlu1 %v668_v13 }
  0xdc   : > { %v667_v14 = vmul.f32 %v665_v12, %v665_v12 }
  0xde   : > { %v671_v15 = vsel %vm654_vm1, %v667_v14, 0.0 }
  0xdf   : > { %672 = vadd.xlane.f32.xlu1 %v671_v15 }
 0x168   : > { %v670_v22 = vpop.xlane.xlu1 %669 }
 0x169   : > { %v674_v23 = vmul.f32 0.03125, %v670_v22 }
 0x16b   : > { %v676_v24 = vadd.f32 1e-05, %v674_v23 }
 0x16c   : > { %v673_v25 = vpop.xlane.xlu1 %672 }
 0x16d   : > { %3032 = vrsqrt.f32 %v676_v24  ;;  %v675_v26 = vmul.f32 0.03125, %v673_v25 }
 0x16f   : > { %v677_v27 = vadd.f32 1e-05, %v675_v26 }
 0x171   : > { %3034 = vrsqrt.f32 %v677_v27 }
 0x177   : > { %v3033_v28 = vpop.eup %3032 }
 0x178   : > { %v680_v30 = vmul.f32 %v3033_v28, %v664_v8 }
 0x17a   : > { %v688_v32 = vmul.f32 %v2697_v29, %v680_v30 }
 0x17b   : > { %v3035_v33 = vpop.eup %3034 }
 0x17c   : > { %v681_v34 = vmul.f32 %v3035_v33, %v665_v12  ;;  %v696_v35 = vadd.f32 %v2698_v31, %v688_v32 }
 0x17e   : > { %v689_v36 = vmul.f32 %v2697_v29, %v681_v34  ;;  %2813 = vmatprep.mubr.msk.f32.mxu1 %vm654_vm1, %v696_v35 }
 0x180   : > { %v697_v37 = vadd.f32 %v2698_v31, %v689_v36 }
 0x182   : > { %2814 = vmatmul.mubr.msk.f32.vlgmr.msra.gmra.mrb[0].mxu1 %vm654_vm1, %v697_v37 }
 0x183   : > { %2818 = vmatprep.mubr.msk.f32.mxu1 %vm3166_vm2, %v3165_v39 }
 0x255   : > { %v2815_v40 = vpop.f32.mrb[0].mxu1 }
 0x256   : > { %v3406_v41 = vadd.f32 %v2815_v40, %v2699_v38  ;;  %v781_v42 = vpop.f32.mrb[1].mxu1 }
 0x257   : > { %v3408_v43 = vadd.f32 %v2699_v38, %v781_v42 }
 0x258   : > { %794 = vrot.lane.b32.xlu1 %v3406_v41, %s3167_s22 }
 0x259   : > { %792 = vrot.lane.b32.xlu0 %v3408_v43, %s3167_s22 }
 0x25c   : > { %796 = vrot.lane.b32.xlu1 %v3408_v43, %s3168_s26 }
 0x25d   : > { %800 = vrot.lane.b32.xlu0 %v3408_v43, %s3169_s16 }
 0x260   : > { %798 = vrot.lane.b32.xlu1 %v3406_v41, %s3168_s26 }
 0x261   : > { %804 = vrot.lane.b32.xlu0 %v3408_v43, %s3170_s17 }
 0x264   : > { %802 = vrot.lane.b32.xlu1 %v3406_v41, %s3169_s16  ;;  %s3175_s16 = smov [#allocation5]  }
 0x268   : > { %881 = vrot.lane.b32.xlu1 %v3406_v41, %s3170_s17 }
 0x2ca   : > { %v3418_v44 = vpop.permute.xlu1 %794 }
 0x2cb   : > { %1033 = vrot.lane.b32.xlu1 %v3418_v44, %s3170_s17  ;;  %v3421_v45 = vpop.permute.xlu0 %792 }
 0x2cc   : > { %957 = vrot.lane.b32.xlu0 %v3421_v45, %s3170_s17 }
 0x2ce   : > { %v3424_v46 = vpop.permute.xlu1 %796 }
 0x2cf   : > { %v3426_v47 = vpop.permute.xlu0 %800 }
 0x2d0   : > { %1109 = vrot.lane.b32.xlu0 %v3424_v46, %s3170_s17 }
 0x2d2   : > { %v3429_v48 = vpop.permute.xlu1 %798 }
 0x2d3   : > { %1185 = vrot.lane.b32.xlu1 %v3429_v48, %s3170_s17  ;;  %v805_v49 = vpop.permute.xlu0 %804 }
 0x2d4   : > { %1261 = vrot.lane.b32.xlu0 %v3426_v47, %s3170_s17  ;;  %2817 = vmatpush3.xpose.msk.msra.mxu1 %vm806_vm3, %v805_v49 }
 0x2d5   : > { %2821 = vmatprep.subr.mxu1 %v3165_v39 }
 0x2d6   : > { %v3435_v50 = vpop.permute.xlu1 %802 }
 0x2d7   : > { %1337 = vrot.lane.b32.xlu1 %v3435_v50, %s3170_s17  ;;  %2819 = vmatmul.mubr.msk.f32.vlgmr.msra.gmra.mrb[2].mxu1 %vm806_vm3, %v3408_v43  ;;  %s2507_s17 = sshll.u32 %s3175_s16, 4  ;;  %s2508_s17 = int_to_ptr.vmem [resolvable:$true] %s2507_s17 }
 0x2d8   : > { %2823 = vmatprep.mubr.msk.f32.mxu1 %vm3166_vm2, %v3165_v39  ;;  %s3104_s20 = scalar_lea.vmem %s2508_s17, 256  ;;  %p3111_p12 = scmp.lt.s32.totalorder %s2508_s17, %s2508_s17 }
 0x2d9   : > { %p3105_p8 = scmp.ne.s32.totalorder %s2508_s17, %s3104_s20  ;;  %p3112_p13 = scmp.lt.s32.totalorder %s3104_s20, %s3104_s20 }
 0x2da   : > { %v882_v51 = vpop.permute.xlu1 %881 }
 0x2db   : > { %2822 = vmatpush3.xpose.msk.msra.mxu1 %vm806_vm3, %v882_v51  ;;  %p3113_p0 = por %p3112_p13, %p3111_p12 }
 0x2dc   : > { %2831 = vmatprep.subr.mxu1 %v3165_v39 }
 0x2de   : > { %2824 = vmatmul.mubr.msk.f32.vlgmr.msra.gmra.mrb[4].mxu1 %vm806_vm3, %v3406_v41 }
 0x2df   : > { %2833 = vmatprep.mubr.msk.f32.mxu1 %vm3166_vm2, %v3165_v39 }
 0x33d   : > { %v1034_v52 = vpop.permute.xlu1 %1033 }
 0x33e   : > { %2832 = vmatpush3.xpose.msk.msra.mxu1 %vm806_vm3, %v1034_v52  ;;  %v958_v53 = vpop.permute.xlu0 %957 }
 0x33f   : > { %2827 = vmatpush3.xpose.msk.msra.mxu0 %vm806_vm3, %v958_v53  ;;  %2841 = vmatprep.subr.mxu1 %v3165_v39 }
 0x340   : > { %2836 = vmatprep.subr.mxu0 %v3165_v39 }
 0x341   : > { %2834 = vmatmul.mubr.msk.f32.vlgmr.msra.gmra.mrb[6].mxu1 %vm806_vm3, %v3418_v44 }
 0x342   : > { %2829 = vmatmul.mubr.msk.f32.vlgmr.msra.gmra.mrb[0].mxu0 %vm806_vm3, %v3421_v45  ;;  %v1110_v54 = vpop.permute.xlu0 %1109  ;;  %2843 = vmatprep.mubr.msk.f32.mxu1 %vm3166_vm2, %v3165_v39 }
 0x343   : > { %2837 = vmatpush3.xpose.msk.msra.mxu0 %vm806_vm3, %v1110_v54  ;;  %2838 = vmatprep.mubr.msk.f32.mxu0 %vm3166_vm2, %v3165_v39 }
 0x344   : > { %2846 = vmatprep.subr.mxu0 %v3165_v39 }
 0x345   : > { %v1186_v55 = vpop.permute.xlu1 %1185 }
 0x346   : > { %2839 = vmatmul.mubr.msk.f32.vlgmr.msra.gmra.mrb[2].mxu0 %vm806_vm3, %v3424_v46  ;;  %2842 = vmatpush3.xpose.msk.msra.mxu1 %vm806_vm3, %v1186_v55  ;;  %v1262_v56 = vpop.permute.xlu0 %1261 }
 0x347   : > { %2847 = vmatpush3.xpose.msk.msra.mxu0 %vm806_vm3, %v1262_v56  ;;  %2848 = vmatprep.mubr.msk.f32.mxu0 %vm3166_vm2, %v3165_v39 }
 0x348   : > { %2851 = vmatprep.subr.mxu1 %v3165_v39  ;;  %2856 = vmatprep.subr.mxu0 %v3165_v39 }
 0x349   : > { %v1338_v57 = vpop.permute.xlu1 %1337  ;;  %2844 = vmatmul.mubr.msk.f32.vlgmr.msra.gmra.mrb[8].mxu1 %vm806_vm3, %v3429_v48 }
 0x34a   : > { %2849 = vmatmul.mubr.msk.f32.vlgmr.msra.gmra.mrb[4].mxu0 %vm806_vm3, %v3426_v47  ;;  %2852 = vmatpush3.xpose.msk.msra.mxu1 %vm806_vm3, %v1338_v57 }
 0x34b   : > { %2853 = vmatprep.mubr.msk.f32.mxu1 %vm3166_vm2, %v3165_v39  ;;  %2861 = vmatprep.subr.mxu1 %v3165_v39 }
 0x34c   : > { %2858 = vmatprep.mubr.msk.f32.mxu0 %vm3166_vm2, %v3165_v39 }
 0x34d   : > { %2854 = vmatmul.mubr.msk.f32.vlgmr.msra.gmra.mrb[10].mxu1 %vm806_vm3, %v3435_v50 }
 0x34e   : > { %2863 = vmatprep.mubr.msk.f32.mxu1 %vm3166_vm2, %v3165_v39 }
 0x3aa   : > { %v877_v58 = vpop.f32.mrb[2].mxu1 }
 0x3ab   : > { %v1413_v59 = vmul.f32 0.35355338, %v877_v58  ;;  %v2820_v60 = vpop.f32.mrb[3].mxu1 }
 0x3ad   : > { %v1421_v61 = vsel %vm806_vm3, %v1413_v59, -inf }
 0x3ae   : > { %1422 = vmax.xlane.f32.xlu0 %v1421_v61 }
 0x3b1   : > { %v953_v62 = vpop.f32.mrb[4].mxu1 }
 0x3b2   : > { %v1414_v63 = vmul.f32 0.35355338, %v953_v62  ;;  %v2825_v0 = vpop.f32.mrb[5].mxu1 }
 0x3b4   : > { %v1424_v1 = vsel %vm806_vm3, %v1414_v63, -inf }
 0x3b5   : > { %1425 = vmax.xlane.f32.xlu1 %v1424_v1 }
 0x414   : > { %v1105_v4 = vpop.f32.mrb[6].mxu1 }
 0x415   : > { %v1416_v5 = vmul.f32 0.35355338, %v1105_v4  ;;  %v1029_v6 = vpop.f32.mrb[0].mxu0  ;;  %v2835_v7 = vpop.f32.mrb[7].mxu1 }
 0x416   : > { %v2830_v8 = vpop.f32.mrb[1].mxu0  ;;  %v1415_v9 = vmul.f32 0.35355338, %v1029_v6 }
 0x417   : > { %v1430_v10 = vsel %vm806_vm3, %v1416_v5, -inf }
 0x418   : > { %1431 = vmax.xlane.f32.xlu0 %v1430_v10  ;;  %v1427_v14 = vsel %vm806_vm3, %v1415_v9, -inf }
 0x419   : > { %v1181_v11 = vpop.f32.mrb[2].mxu0 }
 0x41a   : > { %v2840_v12 = vpop.f32.mrb[3].mxu0  ;;  %v1417_v13 = vmul.f32 0.35355338, %v1181_v11 }
 0x41c   : > { %v1257_v15 = vpop.f32.mrb[8].mxu1  ;;  %1428 = vmax.xlane.f32.xlu0 %v1427_v14  ;;  %v1433_v22 = vsel %vm806_vm3, %v1417_v13, -inf }
 0x41d   : > { %v1418_v16 = vmul.f32 0.35355338, %v1257_v15  ;;  %v2845_v17 = vpop.f32.mrb[9].mxu1  ;;  %v1333_v18 = vpop.f32.mrb[4].mxu0 }
 0x41e   : > { %v2850_v19 = vpop.f32.mrb[5].mxu0  ;;  %v1419_v20 = vmul.f32 0.35355338, %v1333_v18 }
 0x41f   : > { %v1436_v21 = vsel %vm806_vm3, %v1418_v16, -inf }
 0x420   : > { %1437 = vmax.xlane.f32.xlu1 %v1436_v21  ;;  %v1409_v23 = vpop.f32.mrb[10].mxu1  ;;  %1434 = vmax.xlane.f32.xlu0 %v1433_v22  ;;  %v1439_v27 = vsel %vm806_vm3, %v1419_v20, -inf }
 0x421   : > { %v1420_v24 = vmul.f32 0.35355338, %v1409_v23  ;;  %v2855_v25 = vpop.f32.mrb[11].mxu1 }
 0x423   : > { %v1442_v26 = vsel %vm806_vm3, %v1420_v24, -inf }
 0x424   : > { %1443 = vmax.xlane.f32.xlu1 %v1442_v26  ;;  %1440 = vmax.xlane.f32.xlu0 %v1439_v27 }
 0x435   : > { %1585 = vrot.lane.b32.xlu1 %v3406_v41, %s3171_s23 }
 0x439   : > { %1661 = vrot.lane.b32.xlu1 %v3421_v45, %s3171_s23 }
 0x43a   : > { %1509 = vrot.lane.b32.xlu0 %v3408_v43, %s3171_s23 }
 0x43b   : > { %v1423_v28 = vpop.xlane.xlu0 %1422 }
 0x43c   : > { %v1445_v29 = vsub.f32 %v1413_v59, %v1423_v28 }
 0x43d   : > { %1737 = vrot.lane.b32.xlu1 %v3418_v44, %s3171_s23 }
 0x43e   : > { %1813 = vrot.lane.b32.xlu0 %v3424_v46, %s3171_s23  ;;  %v1453_v30 = vmul.f32 1.442695, %v1445_v29 }
 0x440   : > { %3036 = vpow2.f32 %v1453_v30 }
 0x441   : > { %1889 = vrot.lane.b32.xlu1 %v3429_v48, %s3171_s23 }
 0x442   : > { %v1426_v31 = vpop.xlane.xlu1 %1425 }
 0x443   : > { %v1446_v32 = vsub.f32 %v1414_v63, %v1426_v31 }
 0x445   : > { %v1455_v33 = vmul.f32 1.442695, %v1446_v32 }
 0x447   : > { %3038 = vpow2.f32 %v1455_v33 }
 0x44a   : > { %v3504_v34 = vpop.eup %3036 }
 0x44b   : > { %v1469_v35 = vsel %vm806_vm3, %v3504_v34, 0.0 }
 0x451   : > { %v3508_v36 = vpop.eup %3038 }
 0x452   : > { %v1472_v37 = vsel %vm806_vm3, %v3508_v36, 0.0 }
 0x45d   : > { %1470 = vadd.xlane.f32.xlu0 %v1469_v35 }
 0x465   : > { %1473 = vadd.xlane.f32.xlu1 %v1472_v37 }
 0x4a5   : > { %v1432_v38 = vpop.xlane.xlu0 %1431 }
 0x4a6   : > { %v1448_v40 = vsub.f32 %v1416_v5, %v1432_v38 }
 0x4a8   : > { %v1459_v41 = vmul.f32 1.442695, %v1448_v40 }
 0x4a9   : > { %v1429_v42 = vpop.xlane.xlu0 %1428 }
 0x4aa   : > { %3040 = vpow2.f32 %v1459_v41  ;;  %v1447_v43 = vsub.f32 %v1415_v9, %v1429_v42 }
 0x4ac   : > { %v1457_v44 = vmul.f32 1.442695, %v1447_v43 }
 0x4ad   : > { %v1438_v45 = vpop.xlane.xlu1 %1437  ;;  %v1435_v46 = vpop.xlane.xlu0 %1434 }
 0x4ae   : > { %3042 = vpow2.f32 %v1457_v44  ;;  %v1450_v48 = vsub.f32 %v1418_v16, %v1438_v45  ;;  %v1449_v49 = vsub.f32 %v1417_v13, %v1435_v46  ;;  %v2149_v44 = vld [vmem:[%s3703_s24] sm:$0xff]  ;;  %v2150_v45 = vld [vmem:[%s3703_s24 + $0x8] sm:$0xff] }
 0x4af   : > { %v2945_v46 = vpack.c.bf16 %v2150_v45, %v2149_v44  ;;  %v2730_v44 = vld [vmem:[%s623_s19] ss:$0 sm:$0xff] }
 0x4b0   : > { %v1463_v51 = vmul.f32 1.442695, %v1450_v48  ;;  %v1461_v52 = vmul.f32 1.442695, %v1449_v49  ;;  %v2151_v48 = vld [vmem:[%s3703_s24 + $0x10] sm:$0xff]  ;;  %v2152_v49 = vld [vmem:[%s3703_s24 + $0x18] sm:$0xff] }
 0x4b1   : > { %v1444_v53 = vpop.xlane.xlu1 %1443  ;;  %v1441_v54 = vpop.xlane.xlu0 %1440 }
 0x4b2   : > { %3044 = vpow2.f32 %v1463_v51  ;;  %v1452_v55 = vsub.f32 %v1420_v24, %v1444_v53  ;;  %v1451_v56 = vsub.f32 %v1419_v20, %v1441_v54  ;;  %v2949_v51 = vpack.c.bf16 %v2152_v49, %v2151_v48 }
 0x4b3   : > { %3046 = vpow2.f32 %v1461_v52 }
 0x4b4   : > { %v3041_v57 = vpop.eup %3040  ;;  %v1467_v58 = vmul.f32 1.442695, %v1452_v55  ;;  %v1465_v59 = vmul.f32 1.442695, %v1451_v56 }
 0x4b5   : > { %v1586_v60 = vpop.permute.xlu1 %1585  ;;  %v1510_v61 = vpop.permute.xlu0 %1509  ;;  %v1478_v62 = vsel %vm806_vm3, %v3041_v57, 0.0 }
 0x4b6   : > { %3048 = vpow2.f32 %v1467_v58  ;;  %2862 = vmatpush3.msra.mxu1 %v1586_v60  ;;  %1479 = vadd.xlane.f32.xlu1 %v1478_v62 }
 0x4b7   : > { %3050 = vpow2.f32 %v1465_v59  ;;  %2857 = vmatpush3.msra.mxu0 %v1510_v61  ;;  %2871 = vmatprep.subr.mxu1 %v3165_v39 }
 0x4b8   : > { %v3043_v63 = vpop.eup %3042  ;;  %2866 = vmatprep.subr.mxu0 %v3165_v39 }
 0x4b9   : > { %v1475_v0 = vsel %vm806_vm3, %v3043_v63, 0.0  ;;  %v1662_v11 = vpop.permute.xlu1 %1661  ;;  %v1814_v12 = vpop.permute.xlu0 %1813 }
 0x4ba   : > { %1476 = vadd.xlane.f32.xlu0 %v1475_v0 }
 0x4bc   : > { %v3045_v1 = vpop.eup %3044 }
 0x4bd   : > { %v3047_v4 = vpop.eup %3046  ;;  %v1484_v5 = vsel %vm806_vm3, %v3045_v1, 0.0  ;;  %v1738_v13 = vpop.permute.xlu1 %1737 }
 0x4be   : > { %1485 = vadd.xlane.f32.xlu1 %v1484_v5  ;;  %v1481_v6 = vsel %vm806_vm3, %v3047_v4, 0.0 }
 0x4bf   : > { %1482 = vadd.xlane.f32.xlu0 %v1481_v6 }
 0x4c0   : > { %v3518_v7 = vpop.eup %3048 }
 0x4c1   : > { %v3520_v8 = vpop.eup %3050  ;;  %v1490_v9 = vsel %vm806_vm3, %v3518_v7, 0.0  ;;  %v1890_v15 = vpop.permute.xlu1 %1889 }
 0x4c2   : > { %1491 = vadd.xlane.f32.xlu1 %v1490_v9  ;;  %v1487_v10 = vsel %vm806_vm3, %v3520_v8, 0.0 }
 0x4c3   : > { %1488 = vadd.xlane.f32.xlu0 %v1487_v10 }
 0x4d3   : > { %2041 = vrot.lane.b32.xlu1 %v3435_v50, %s3171_s23 }
 0x4d9   : > { %1965 = vrot.lane.b32.xlu0 %v3426_v47, %s3171_s23 }
 0x4ea   : > { %v1471_v14 = vpop.xlane.xlu0 %1470 }
 0x4eb   : > { %3052 = vrcp.f32 %v1471_v14 }
 0x4f2   : > { %v1474_v16 = vpop.xlane.xlu1 %1473 }
 0x4f3   : > { %3054 = vrcp.f32 %v1474_v16 }
 0x4f5   : > { %v3053_v17 = vpop.eup %3052 }
 0x4f6   : > { %v1494_v18 = vmul.f32 %v3053_v17, %v3504_v34 }
 0x4f8   : > { %2859 = vmatmul.mubr.msk.f32.vlgmr.msra.gmra.mrb[6].mxu0 %vm806_vm3, %v1494_v18 }
 0x4f9   : > { %2867 = vmatpush3.msra.mxu0 %v1662_v11  ;;  %2868 = vmatprep.mubr.msk.f32.mxu0 %vm3166_vm2, %v3165_v39 }
 0x4fa   : > { %2876 = vmatprep.subr.mxu0 %v3165_v39 }
 0x4fd   : > { %v3055_v47 = vpop.eup %3054 }
 0x4fe   : > { %v1496_v50 = vmul.f32 %v3055_v47, %v3508_v36 }
 0x500   : > { %2864 = vmatmul.mubr.msk.f32.vlgmr.msra.gmra.mrb[12].mxu1 %vm806_vm3, %v1496_v50 }
 0x501   : > { %2872 = vmatpush3.msra.mxu1 %v1738_v13  ;;  %2873 = vmatprep.mubr.msk.f32.mxu1 %vm3166_vm2, %v3165_v39  ;;  %v2726_v13 = vld [vmem:[%s3704_s21] ss:$0 sm:$0xff] }
 0x502   : > { %2881 = vmatprep.subr.mxu1 %v3165_v39 }
 0x543   : > { %v1480_v19 = vpop.xlane.xlu1 %1479 }
 0x544   : > { %3056 = vrcp.f32 %v1480_v19 }
 0x547   : > { %v1477_v20 = vpop.xlane.xlu0 %1476 }
 0x548   : > { %3058 = vrcp.f32 %v1477_v20 }
 0x54b   : > { %v1486_v21 = vpop.xlane.xlu1 %1485 }
 0x54c   : > { %3060 = vrcp.f32 %v1486_v21  ;;  %v1483_v22 = vpop.xlane.xlu0 %1482 }
 0x54d   : > { %3062 = vrcp.f32 %v1483_v22 }
 0x54e   : > { %v3057_v23 = vpop.eup %3056 }
 0x54f   : > { %v1500_v24 = vmul.f32 %v3057_v23, %v3041_v57  ;;  %v1492_v25 = vpop.xlane.xlu1 %1491 }
 0x550   : > { %3064 = vrcp.f32 %v1492_v25  ;;  %v1489_v26 = vpop.xlane.xlu0 %1488 }
 0x551   : > { %3066 = vrcp.f32 %v1489_v26  ;;  %2874 = vmatmul.mubr.msk.f32.vlgmr.msra.gmra.mrb[14].mxu1 %vm806_vm3, %v1500_v24 }
 0x552   : > { %v3059_v27 = vpop.eup %3058  ;;  %2882 = vmatpush3.msra.mxu1 %v1890_v15  ;;  %2883 = vmatprep.mubr.msk.f32.mxu1 %vm3166_vm2, %v3165_v39 }
 0x553   : > { %v1498_v28 = vmul.f32 %v3059_v27, %v3043_v63  ;;  %2891 = vmatprep.subr.mxu1 %v3165_v39  ;;  %v2042_v33 = vpop.permute.xlu1 %2041 }
 0x554   : > { %v1966_v35 = vpop.permute.xlu0 %1965 }
 0x555   : > { %2869 = vmatmul.mubr.msk.f32.vlgmr.msra.gmra.mrb[8].mxu0 %vm806_vm3, %v1498_v28  ;;  %v2287_v28 = vld [vmem:[%s3350_s28] sm:$0xff] }
 0x556   : > { %v3061_v29 = vpop.eup %3060  ;;  %2877 = vmatpush3.msra.mxu0 %v1814_v12  ;;  %2878 = vmatprep.mubr.msk.f32.mxu0 %vm3166_vm2, %v3165_v39 }
 0x557   : > { %v3063_v30 = vpop.eup %3062  ;;  %v1504_v31 = vmul.f32 %v3061_v29, %v3045_v1  ;;  %2886 = vmatprep.subr.mxu0 %v3165_v39  ;;  %v2288_v29 = vld [vmem:[%s3350_s28 + $0x8] sm:$0xff] }
 0x558   : > { %v1502_v32 = vmul.f32 %v3063_v30, %v3047_v4  ;;  %v2953_v30 = vpack.c.bf16 %v2288_v29, %v2287_v28 }
 0x559   : > { %2884 = vmatmul.mubr.msk.f32.vlgmr.msra.gmra.mrb[16].mxu1 %vm806_vm3, %v1504_v31  ;;  %v2289_v31 = vld [vmem:[%s3350_s28 + $0x10] sm:$0xff] }
 0x55a   : > { %v3065_v34 = vpop.eup %3064  ;;  %2879 = vmatmul.mubr.msk.f32.vlgmr.msra.gmra.mrb[10].mxu0 %vm806_vm3, %v1502_v32  ;;  %2892 = vmatpush3.msra.mxu1 %v2042_v33  ;;  %v2290_v32 = vld [vmem:[%s3350_s28 + $0x18] sm:$0xff] }
 0x55b   : > { %v3067_v36 = vpop.eup %3066  ;;  %v1508_v37 = vmul.f32 %v3065_v34, %v3518_v7  ;;  %2887 = vmatpush3.msra.mxu0 %v1966_v35  ;;  %2888 = vmatprep.mubr.msk.f32.mxu0 %vm3166_vm2, %v3165_v39  ;;  %v2957_v33 = vpack.c.bf16 %v2290_v32, %v2289_v31 }
 0x55c   : > { %v1506_v38 = vmul.f32 %v3067_v36, %v3520_v8  ;;  %2893 = vmatprep.mubr.msk.f32.mxu1 %vm3166_vm2, %v3165_v39  ;;  %2946 = vmatprep.subr.bf16.mxu0 %v2945_v46 }
 0x55d   : > { %2894 = vmatmul.mubr.msk.f32.vlgmr.msra.gmra.mrb[18].mxu1 %vm806_vm3, %v1508_v37  ;;  %2954 = vmatprep.subr.bf16.mxu1 %v2953_v30 }
 0x55e   : > { %2889 = vmatmul.mubr.msk.f32.vlgmr.msra.gmra.mrb[12].mxu0 %vm806_vm3, %v1506_v38  ;;  %2956 = vmatpush3.bf16.msra.mxu1 %v2953_v30 }
 0x55f   : > { %2948 = vmatpush3.bf16.msra.mxu0 %v2945_v46  ;;  %2958 = vmatprep.subr.bf16.mxu1 %v2957_v33 }
 0x560   : > { %2950 = vmatprep.subr.bf16.mxu0 %v2949_v51 }
 0x562   : > { %2960 = vmatpush3.bf16.msra.mxu1 %v2957_v33 }
 0x563   : > { %2952 = vmatpush3.bf16.msra.mxu0 %v2949_v51 }
 0x5cb   : > { %v1581_v40 = vpop.f32.mrb[6].mxu0 }
 0x5cc   : > { %v2860_v41 = vpop.f32.mrb[7].mxu0 }
 0x5d3   : > { %v1657_v42 = vpop.f32.mrb[12].mxu1 }
 0x5d4   : > { %v2865_v43 = vpop.f32.mrb[13].mxu1 }
 0x624   : > { %v1809_v52 = vpop.f32.mrb[14].mxu1 }
 0x625   : > { %2121 = vrot.lane.b32.xlu1 %v1809_v52, %s3172_s0  ;;  %v2875_v39 = vpop.f32.mrb[15].mxu1 }
 0x626   : > { %v2397_v39 = vld [vmem:[%s3360_s14] sm:$0xff] }
 0x628   : > { %v1733_v53 = vpop.f32.mrb[8].mxu0 }
 0x629   : > { %2119 = vrot.lane.b32.xlu0 %v1733_v53, %s3172_s0  ;;  %v2870_v54 = vpop.f32.mrb[9].mxu0  ;;  %v2398_v53 = vld [vmem:[%s3360_s14 + $0x8] sm:$0xff] }
 0x62a   : > { %v2961_v54 = vpack.c.bf16 %v2398_v53, %v2397_v39 }
 0x62c   : > { %v1961_v55 = vpop.f32.mrb[16].mxu1  ;;  %2962 = vmatprep.subr.bf16.mxu0 %v2961_v54 }
 0x62d   : > { %v1885_v56 = vpop.f32.mrb[10].mxu0  ;;  %2129 = vrot.lane.b32.xlu1 %v1961_v55, %s3173_s3  ;;  %v2885_v57 = vpop.f32.mrb[17].mxu1  ;;  %v2399_v55 = vld [vmem:[%s3360_s14 + $0x10] sm:$0xff] }
 0x62e   : > { %2127 = vrot.lane.b32.xlu0 %v1885_v56, %s3173_s3  ;;  %v2880_v58 = vpop.f32.mrb[11].mxu0  ;;  %v2400_v56 = vld [vmem:[%s3360_s14 + $0x18] sm:$0xff] }
 0x62f   : > { %v2965_v57 = vpack.c.bf16 %v2400_v56, %v2399_v55  ;;  %v2401_v58 = vld [vmem:[%s3360_s14 + $0x20] sm:$0xff] }
 0x630   : > { %v2113_v59 = vpop.f32.mrb[18].mxu1 }
 0x631   : > { %v2037_v60 = vpop.f32.mrb[12].mxu0  ;;  %2137 = vrot.lane.b32.xlu1 %v2113_v59, %s3174_s25  ;;  %v2895_v61 = vpop.f32.mrb[19].mxu1  ;;  %v2402_v59 = vld [vmem:[%s3360_s14 + $0x28] sm:$0xff] }
 0x632   : > { %2135 = vrot.lane.b32.xlu0 %v2037_v60, %s3174_s25  ;;  %v2890_v62 = vpop.f32.mrb[13].mxu0  ;;  %v2969_v60 = vpack.c.bf16 %v2402_v59, %v2401_v58  ;;  %v2403_v61 = vld [vmem:[%s3360_s14 + $0x30] sm:$0xff] }
 0x633   : > { %v2404_v62 = vld [vmem:[%s3360_s14 + $0x38] sm:$0xff]  ;;  %s3705_s14 = sld [smem:[#allocation9_spill]] }
 0x639   : > { %s3706_s23 = sadd.s32 4294967295, %s3705_s14  }
 0x63a   : > { %p3624_p6 = scmp.eq.s32.totalorder %s3706_s23, 1 }
 0x63c   : > { %p3106_p10 = pnand %p3105_p8, %p3624_p6 }
 0x63e   : > { %p3107_p11 = pneg %p3106_p10 }
 0x640   : > { %p3114_p1 = pnand %p3113_p0, %p3107_p11 }
 0x697   : > { %v2122_v63 = vpop.permute.xlu1 %2121 }
 0x698   : > { %v2142_v5 = vsel %vm806_vm3, %v1657_v42, %v2122_v63  ;;  %v2729_v42 = vld [vmem:[%s620_s1] ss:$0 sm:$0xff]  ;;  %v2973_v63 = vpack.c.bf16 %v2404_v62, %v2403_v61 }
 0x69b   : > { %v2120_v0 = vpop.permute.xlu0 %2119 }
 0x69c   : > { %v2141_v6 = vsel %vm806_vm3, %v1581_v40, %v2120_v0  ;;  %v2731_v0 = vld [vmem:[%s631_s29] ss:$0 sm:$0xff] }
 0x69f   : > { %v2130_v1 = vpop.permute.xlu1 %2129 }
 0x6a0   : > { %v2128_v4 = vpop.permute.xlu0 %2127  ;;  %v2145_v7 = vsel %vm2143_vm4, %v2142_v5, %v2130_v1 }
 0x6a1   : > { %v2144_v9 = vsel %vm2143_vm4, %v2141_v6, %v2128_v4 }
 0x6a3   : > { %v2138_v8 = vpop.permute.xlu1 %2137 }
 0x6a4   : > { %v2148_v10 = vsel %vm2146_vm5, %v2145_v7, %v2138_v8  ;;  %v2136_v11 = vpop.permute.xlu0 %2135 }
 0x6a5   : > { %v2147_v12 = vsel %vm2146_vm5, %v2144_v9, %v2136_v11 }
 0x6a6   : > { %2904 = vmatprep.mubr.msk.f32.mxu0 %vm654_vm1, %v2147_v12 }
 0x6a7   : > { %2905 = vmatmul.mubr.msk.f32.vlgmr.msra.gmra.mrb[14].mxu0 %vm654_vm1, %v2148_v10 }
 0x6a8   : > { %2964 = vmatpush3.bf16.msra.mxu0 %v2961_v54 }
 0x6a9   : > { %2966 = vmatprep.subr.bf16.mxu0 %v2965_v57 }
 0x6ac   : > { %2968 = vmatpush3.bf16.msra.mxu0 %v2965_v57 }
 0x6ad   : > { %2970 = vmatprep.subr.bf16.mxu0 %v2969_v60 }
 0x6b0   : > { %2972 = vmatpush3.bf16.msra.mxu0 %v2969_v60 }
 0x6b1   : > { %2974 = vmatprep.subr.bf16.mxu0 %v2973_v63 }
 0x6b4   : > { %2976 = vmatpush3.bf16.msra.mxu0 %v2973_v63 }
 0x77a   : > { %v2906_v14 = vpop.f32.mrb[14].mxu0 }
 0x77b   : > { %v2238_v15 = vadd.f32 %v2906_v14, %v2726_v13  ;;  %v2232_v16 = vpop.f32.mrb[15].mxu0 }
 0x77c   : > { %v2233_v17 = vadd.f32 %v2726_v13, %v2232_v16 }
 0x77d   : > { %v3574_v18 = vadd.f32 %v2238_v15, %v3369_v3 }
 0x77e   : > { %v3577_v47 = vadd.f32 %v2233_v17, %v3367_v2 }
 0x77f   : > { %v2248_v50 = vsel %vm654_vm1, %v3574_v18, 0.0 }
 0x780   : > { %2249 = vadd.xlane.f32.xlu1 %v2248_v50  ;;  %v2245_v19 = vsel %vm654_vm1, %v3577_v47, 0.0 }
 0x781   : > { %2246 = vadd.xlane.f32.xlu0 %v2245_v19 }
 0x80d   : > { %v2250_v20 = vpop.xlane.xlu1 %2249 }
 0x80e   : > { %v2252_v21 = vmul.f32 0.03125, %v2250_v20  ;;  %v2247_v22 = vpop.xlane.xlu0 %2246 }
 0x80f   : > { %v2251_v3 = vmul.f32 0.03125, %v2247_v22 }
 0x810   : > { %v2254_v23 = vsub.f32 %v3574_v18, %v2252_v21 }
 0x811   : > { %v2253_v2 = vsub.f32 %v3577_v47, %v2251_v3 }
 0x812   : > { %v2256_v26 = vmul.f32 %v2254_v23, %v2254_v23 }
 0x813   : > { %v2255_v24 = vmul.f32 %v2253_v2, %v2253_v2 }
 0x814   : > { %v2260_v27 = vsel %vm654_vm1, %v2256_v26, 0.0 }
 0x815   : > { %v2257_v25 = vsel %vm654_vm1, %v2255_v24, 0.0 }
 0x816   : > { %2258 = vadd.xlane.f32.xlu0 %v2257_v25 }
 0x81a   : > { %2261 = vadd.xlane.f32.xlu0 %v2260_v27 }
 0x8a3   : > { %v2259_v34 = vpop.xlane.xlu0 %2258 }
 0x8a4   : > { %v2263_v35 = vmul.f32 0.03125, %v2259_v34 }
 0x8a6   : > { %v2265_v36 = vadd.f32 1e-05, %v2263_v35 }
 0x8a7   : > { %v2262_v37 = vpop.xlane.xlu0 %2261 }
 0x8a8   : > { %3068 = vrsqrt.f32 %v2265_v36  ;;  %v2264_v38 = vmul.f32 0.03125, %v2262_v37 }
 0x8aa   : > { %v2266_v40 = vadd.f32 1e-05, %v2264_v38 }
 0x8ac   : > { %3070 = vrsqrt.f32 %v2266_v40 }
 0x8b2   : > { %v3069_v41 = vpop.eup %3068 }
 0x8b3   : > { %v2269_v43 = vmul.f32 %v3069_v41, %v2253_v2  ;;  %v2734_v2 = vld [vmem:[%s639_s27] ss:$0 sm:$0xff] }
 0x8b5   : > { %v2277_v45 = vmul.f32 %v2729_v42, %v2269_v43 }
 0x8b6   : > { %v3071_v46 = vpop.eup %3070 }
 0x8b7   : > { %v2270_v48 = vmul.f32 %v3071_v46, %v2254_v23  ;;  %v2285_v49 = vadd.f32 %v2730_v44, %v2277_v45 }
 0x8b9   : > { %v2278_v51 = vmul.f32 %v2729_v42, %v2270_v48  ;;  %2915 = vmatprep.mubr.msk.f32.mxu1 %vm654_vm1, %v2285_v49 }
 0x8bb   : > { %v2286_v52 = vadd.f32 %v2730_v44, %v2278_v51 }
 0x8bd   : > { %2916 = vmatmul.mubr.msk.f32.vlgmr.msra.gmra.mrb[20].mxu1 %vm654_vm1, %v2286_v52 }
 0x990   : > { %v2917_v1 = vpop.f32.mrb[20].mxu1 }
 0x991   : > { %v2376_v4 = vadd.f32 %v2917_v1, %v2731_v0  ;;  %v2370_v5 = vpop.f32.mrb[21].mxu1 }
 0x992   : > { %v2371_v6 = vadd.f32 %v2731_v0, %v2370_v5 }
 0x993   : > { %v2382_v7 = vmul.f32 %v2376_v4, %v2376_v4  ;;  %v2380_v22 = vmul.f32 0.5, %v2376_v4 }
 0x994   : > { %v2381_v8 = vmul.f32 %v2371_v6, %v2371_v6  ;;  %v2379_v20 = vmul.f32 0.5, %v2371_v6 }
 0x995   : > { %v2384_v9 = vmul.f32 %v2382_v7, %v2376_v4 }
 0x996   : > { %v2383_v10 = vmul.f32 %v2381_v8, %v2371_v6 }
 0x997   : > { %v2386_v11 = vmul.f32 0.044715, %v2384_v9 }
 0x998   : > { %v2385_v12 = vmul.f32 0.044715, %v2383_v10 }
 0x999   : > { %v2388_v13 = vadd.f32 %v2386_v11, %v2376_v4 }
 0x99a   : > { %v2387_v14 = vadd.f32 %v2385_v12, %v2371_v6 }
 0x99b   : > { %v2390_v15 = vmul.f32 0.7978846, %v2388_v13 }
 0x99c   : > { %v2389_v16 = vmul.f32 0.7978846, %v2387_v14 }
 0x99d   : > { %3072 = vtanh.f32 %v2390_v15 }
 0x99e   : > { %3074 = vtanh.f32 %v2389_v16 }
 0x9a7   : > { %v3073_v17 = vpop.eup %3072 }
 0x9a8   : > { %v3075_v50 = vpop.eup %3074  ;;  %v2394_v19 = vadd.f32 1.0, %v3073_v17 }
 0x9a9   : > { %v2393_v21 = vadd.f32 1.0, %v3075_v50 }
 0x9aa   : > { %v2396_v23 = vmul.f32 %v2394_v19, %v2380_v22 }
 0x9ab   : > { %v2395_v3 = vmul.f32 %v2393_v21, %v2379_v20 }
 0x9ad   : > { %2934 = vmatprep.mubr.msk.f32.mxu0 %vm2412_vm6, %v2395_v3 }
 0x9ae   : > { %2935 = vmatmul.mubr.msk.f32.vlgmr.msra.gmra.mrb[16].mxu0 %vm2412_vm6, %v2396_v23 }
 0xa81   : > { %v2936_v24 = vpop.f32.mrb[16].mxu0 }
 0xa82   : > { %v2491_v25 = vadd.f32 %v2936_v24, %v2734_v2  ;;  %v2485_v26 = vpop.f32.mrb[17].mxu0 }
 0xa83   : > { %v2486_v27 = vadd.f32 %v2734_v2, %v2485_v26 }
 0xa84   : > { %v2495_v28 = vadd.f32 %v2491_v25, %v3574_v18 }
 0xa85   : > { %v2494_v29 = vadd.f32 %v2486_v27, %v3577_v47 }
 0xa86   : > { %2497 = vst.msk [vmem:[#allocation5 + $0x8] sm:$0xff] %vm654_vm1, %v2495_v28 }
 0xa87   : > { %2496 = vst.msk [vmem:[#allocation5] sm:$0xff] %vm654_vm1, %v2494_v29 }
 0xa88   : > { %3117 = shalt.err (!%p3114_p1)
}
 0xa89   : > { %s3708_s25 = sld [smem:[#allocation15_spill]] }
 0xa8f   : > { %s3709_s30 = smov %s3708_s25  ;;  %s3118_s15 = scalar_lea.hbm %s3708_s25, 256 }
 0xa90   : > { %p3119_p2 = scmp.ne.s32.totalorder %s3709_s30, %s3118_s15  ;;  %p3124_p9 = scmp.lt.u32.totalorder %s3118_s15, %s3709_s30 }
 0xa92   : > { %p3120_p5 = pnand %p3119_p2, %p3624_p6 }
 0xa94   : > { %p3121_p7 = pneg %p3120_p5 }
 0xa96   : > { %p3126_p3 = pnand %p3124_p9, %p3121_p7 }
 0xa98   : > { %3129 = shalt.err (!%p3126_p3)
}
 0xa99   : > { %s3176_s22 = smov 128  }
 0xa9a   : > { %2982 = dma.vmem_to_hbm [thread:$0]  (%p3624_p6), %s2508_s17, 256, %s3709_s30, [#allocation4], %s3176_s22, %s3176_s22, %s3172_s0  }
 0xa9b   : > { %3147 = dma.done.wait (%p3624_p6), [#allocation4], 256  }
 0xa9c   : > { %3149 = vsyncadd (%p3624_p6), [#allocation4], 4294967040 }
 0xa9d PF: > { %s3710_s14 = sld [smem:[#allocation9_spill]]  ;;  %s3711_s25 = sld [smem:[#allocation8_spill]] }
 0xa9e   : > { %s3712_s26 = sld [smem:[#allocation10_spill]] }
 0xaa3   : > { %s25_s27 = sadd.s32 1, %s3710_s14  }
 0xaa4   : > { %p22_p4 = scmp.ge.s32.totalorder %s25_s27, 4  }
 0xaa6   :  { %24 = sbr.rel (!%p22_p4) target bundleno = 8 (0x8), region = 143 }
 0xaad   :  { %2523 = vsyncpa [#allocation3], 1 }
 0xaae   :  { %2525 = vsyncpa [#allocation3 + $0x1], 1 }
 0xaaf   :  { %2526 = vsyncpa [#allocation4], 1 }
 0xab0   :  { %2528 = vsyncpa [#allocation4 + $0x1], 1 }

</bundles_post_ra>
